<compile_context>
chip_gen: v7x
topology: tpu7x:2x2x1
jax: 0.10.0
libtpu: 0.0.40
codegen_flags: <defaults>
</compile_context>

<pallas_src>
import jax
import jax.numpy as jnp
from jax import lax
from jax.experimental import pallas as pl
from jax.experimental.pallas import tpu as pltpu


_MAX_BATCH_TILE = 32768        # rows per grid step (upper cap; VMEM budget is the real bound)
_MIN_ROWS_FOR_SPLIT = 2048     # below this, don't force a 2-tile split for megacore


def _round_up(v, m):
    return -(-v // m) * m


def _vmem_budgets():
    """(x double-buffer budget bytes, vmem_limit_bytes), gated by TPU generation."""
    try:
        info = pltpu.get_tpu_info()
        vmem_bytes = int(getattr(info, "vmem_capacity_bytes"))
    except Exception:
        vmem_bytes = 64 << 20  # conservative: assume v7x-class 64 MiB VMEM
    if vmem_bytes >= (100 << 20):      # v5e / v6e: 128 MiB physical VMEM
        return 48 << 20, 96 << 20
    return 24 << 20, 48 << 20          # v7x-class: 64 MiB physical VMEM


def _choose_batch_tile(n, d, itemsize, sub, x_budget_bytes):
    n_pad = _round_up(max(n, 1), sub)
    # Double-buffered x tile (2 * tile * d * itemsize) dominates VMEM use.
    cap = max(sub, (x_budget_bytes // (2 * d * itemsize)) // sub * sub)
    tile = min(_MAX_BATCH_TILE, cap, n_pad)
    # Megacore: if the whole (large) batch fits in one tile, split in two so the
    # "parallel" grid axis can shard across v7x's two TensorCores.
    if tile >= n_pad and n_pad >= _MIN_ROWS_FOR_SPLIT:
        tile = _round_up(-(-n_pad // 2), sub)
    return max(sub, (tile // sub) * sub)


def _predict_kernel(x_ref, w1_ref, b1_ref, w2_ref, b2_ref, o_ref):
    x = x_ref[...]                                                  # (TB, D)
    # Linear(D, 8) on the MXU with f32 accumulation; bias + ReLU on the VPU.
    h = jnp.dot(x, w1_ref[...], preferred_element_type=jnp.float32)  # (TB, 8) f32
    h = jnp.maximum(h + b1_ref[...], 0.0)
    # Dropout(drop_ratio=0) == identity -> no-op.
    # Linear(8, 1): contract the hidden dim of W2 (1, 8) against h (TB, 8) so the result is
    # a lane-dense (1, TB) row.
    row = lax.dot_general(
        w2_ref[...], h,
        dimension_numbers=(((1,), (1,)), ((), ())),
        preferred_element_type=jnp.float32)                          # (1, TB)
    row = (row + b2_ref[0, 0]).astype(o_ref.dtype)
    # Store into the full-sublane (1, SUB, M) output block via static lane-slices
    # (avoids any sublane-1 output block and any in-kernel lane->sublane reshape).
    sub, m = o_ref.shape[1], o_ref.shape[2]
    for s in range(sub):  # static unroll (sub is 8 or 16)
        o_ref[:, s, :] = row[:, s * m:(s + 1) * m]


def predict_layer(x, w1, b1, w2, b2, *, batch_tile=None):
    """Forward pass of PredictLayer.

    x:  (N, D) activations (f32 or bf16).
    w1: (D, 8)   first linear weight (transposed nn.Linear(D,8).weight).
    b1: (8,) or (1, 8).
    w2: (1, 8) or (8, 1)  second linear weight.
    b2: any single-element shape.
    Returns (N, 1) in x.dtype.
    """
    n, d = x.shape
    dtype = x.dtype
    itemsize = jnp.dtype(dtype).itemsize
    sub = max(8, 32 // itemsize)  # 8 sublanes for f32, 16 for bf16, ...

    x_budget, vmem_limit = _vmem_budgets()
    if batch_tile is None:
        batch_tile = _choose_batch_tile(n, d, itemsize, sub, x_budget)
    batch_tile = max(sub, (batch_tile // sub) * sub)

    num_tiles = -(-n // batch_tile)            # last x block may be partial (no pad copy)
    m = batch_tile // sub

    # Small resident operands: weights in the compute dtype, biases in f32.
    w1c = jnp.asarray(w1).astype(dtype).reshape(d, 8)
    b1_row = jnp.asarray(b1, jnp.float32).reshape(1, 8)
    w2_row = jnp.asarray(w2, jnp.float32).reshape(1, 8)
    b2_s = jnp.asarray(b2, jnp.float32).reshape(1, 1)

    cost = pl.CostEstimate(
        flops=2 * n * d * 8 + 4 * n * 8,
        transcendentals=0,
        bytes_accessed=n * d * itemsize + num_tiles * batch_tile * itemsize
        + w1c.size * itemsize + (b1_row.size + w2_row.size + b2_s.size) * 4,
    )

    out = pl.pallas_call(
        _predict_kernel,
        out_shape=jax.ShapeDtypeStruct((num_tiles, sub, m), dtype),
        grid_spec=pl.GridSpec(
            grid=(num_tiles,),
            in_specs=[
                pl.BlockSpec((batch_tile, d), lambda i: (i, 0)),     # x tile (streamed)
                pl.BlockSpec((d, 8), lambda i: (0, 0)),              # W1 (resident)
                pl.BlockSpec((1, 8), lambda i: (0, 0)),              # b1 (resident)
                pl.BlockSpec((1, 8), lambda i: (0, 0)),              # W2 row (resident)
                pl.BlockSpec(memory_space=pltpu.MemorySpace.SMEM),   # b2 scalar
            ],
            out_specs=pl.BlockSpec((1, sub, m), lambda i: (i, 0, 0)),
        ),
        compiler_params=pltpu.CompilerParams(
            dimension_semantics=("parallel",),
            vmem_limit_bytes=vmem_limit,
        ),
        cost_estimate=cost,
    )(x, w1c, b1_row, w2_row, b2_s)

    # Row-major flatten of (num_tiles, sub, m) restores original row order; drop the
    # garbage rows coming from the partial last input block.
    return out.reshape(num_tiles * batch_tile, 1)[:n]


def init_params(embedding_dim, key):
    """Deterministic init mimicking PyTorch nn.Linear (uniform +-1/sqrt(fan_in))."""
    k1, k2, k3, k4 = jax.random.split(key, 4)
    bound1 = 1.0 / jnp.sqrt(float(embedding_dim))
    w1 = jax.random.uniform(k1, (embedding_dim, 8), jnp.float32, -bound1, bound1)
    b1 = jax.random.uniform(k2, (1, 8), jnp.float32, -bound1, bound1)
    bound2 = 1.0 / jnp.sqrt(8.0)
    w2 = jax.random.uniform(k3, (1, 8), jnp.float32, -bound2, bound2)  # nn.Linear(8,1).weight layout
    b2 = jax.random.uniform(k4, (1, 1), jnp.float32, -bound2, bound2)
    return w1, b1, w2, b2


if __name__ == "__main__":
    key = jax.random.PRNGKey(0)
    k_x, k_p, k_x2, k_x3 = jax.random.split(key, 4)

    embedding_dim = 32
    w1, b1, w2, b2 = init_params(embedding_dim, k_p)

    def ref_fn(xx):
        return jnp.maximum(xx @ w1 + b1, 0.0) @ w2.T + b2

    # Case 1: small batch, multiple of 8.
    x = jax.random.normal(k_x, (16, embedding_dim), jnp.float32)
    out = jax.block_until_ready(predict_layer(x, w1, b1, w2, b2))
    assert out.shape == (16, 1)
    assert jnp.allclose(out, ref_fn(x), atol=1e-4, rtol=1e-4)

    # Case 2: ragged batch (partial last block; no wrapper-side pad copy).
    x2 = jax.random.normal(k_x2, (50, embedding_dim), jnp.float32)
    out2 = jax.block_until_ready(predict_layer(x2, w1, b1, w2, b2))
    assert out2.shape == (50, 1)
    assert jnp.allclose(out2, ref_fn(x2), atol=1e-4, rtol=1e-4)

    # Case 3: multi-tile grid with a forced small tile (exercises the tiled path + partial tail).
    x3 = jax.random.normal(k_x3, (20, embedding_dim), jnp.float32)
    out3 = jax.block_until_ready(predict_layer(x3, w1, b1, w2, b2, batch_tile=8))
    assert out3.shape == (20, 1)
    assert jnp.allclose(out3, ref_fn(x3), atol=1e-4, rtol=1e-4)

    print("KERNEL_OK")
</pallas_src>

<mosaic_0001>
module attributes {stable_mosaic.version = 11 : i64} {
  func.func @_predict_kernel(%arg0: i32, %arg1: memref<16x32xf32, #tpu.memory_space<vmem>>, %arg2: memref<32x8xf32, #tpu.memory_space<vmem>>, %arg3: memref<1x8xf32, #tpu.memory_space<vmem>>, %arg4: memref<1x8xf32, #tpu.memory_space<vmem>>, %arg5: memref<1x1xf32, #tpu.memory_space<smem>>, %arg6: memref<1x8x2xf32, #tpu.memory_space<vmem>>) attributes {dimension_semantics = [#tpu.dimension_semantics<parallel>], iteration_bounds = array<i64: 1>, scalar_prefetch = 0 : i64, scratch_operands = 0 : i64, tpu.core_type = #tpu.core_type<tc>, window_params = [{transform_indices = @transform_0, window_bounds = array<i64: 16, 32>}, {pipeline_mode = #tpu.pipeline_mode<synchronous>, transform_indices = @transform_1, window_bounds = array<i64: 32, 8>}, {pipeline_mode = #tpu.pipeline_mode<synchronous>, transform_indices = @transform_2, window_bounds = array<i64: 1, 8>}, {pipeline_mode = #tpu.pipeline_mode<synchronous>, transform_indices = @transform_3, window_bounds = array<i64: 1, 8>}, {transform_indices = @transform_4, window_bounds = array<i64: 1, 1>}, {transform_indices = @transform_5, window_bounds = array<i64: 1, 8, 2>}]} {
    %c0 = arith.constant 0 : index
    %c0_0 = arith.constant 0 : index
    %0 = vector.load %arg1[%c0, %c0_0] : memref<16x32xf32, #tpu.memory_space<vmem>>, vector<16x32xf32>
    %c0_1 = arith.constant 0 : index
    %c0_2 = arith.constant 0 : index
    %1 = vector.load %arg2[%c0_1, %c0_2] : memref<32x8xf32, #tpu.memory_space<vmem>>, vector<32x8xf32>
    %cst = arith.constant dense<0.000000e+00> : vector<16x8xf32>
    %2 = tpu.matmul %0, %1, %cst {dimension_numbers = #tpu.dot_dimension_numbers<[1], [0], [0], [1], [0, 0, 1, 1], [], []>} : vector<16x32xf32>, vector<32x8xf32>, vector<16x8xf32> -> vector<16x8xf32>
    %c0_3 = arith.constant 0 : index
    %c0_4 = arith.constant 0 : index
    %3 = vector.load %arg3[%c0_3, %c0_4] : memref<1x8xf32, #tpu.memory_space<vmem>>, vector<1x8xf32>
    %4 = vector.broadcast %3 : vector<1x8xf32> to vector<16x8xf32>
    %5 = arith.addf %2, %4 : vector<16x8xf32>
    %cst_5 = arith.constant 0.000000e+00 : f32
    %6 = vector.broadcast %cst_5 : f32 to vector<16x8xf32>
    %7 = arith.maximumf %5, %6 : vector<16x8xf32>
    %c0_6 = arith.constant 0 : index
    %c0_7 = arith.constant 0 : index
    %8 = vector.load %arg4[%c0_6, %c0_7] : memref<1x8xf32, #tpu.memory_space<vmem>>, vector<1x8xf32>
    %cst_8 = arith.constant dense<0.000000e+00> : vector<1x16xf32>
    %9 = tpu.matmul %8, %7, %cst_8 {dimension_numbers = #tpu.dot_dimension_numbers<[1], [1], [0], [0], [0, 0, 1, 0], [], []>} : vector<1x8xf32>, vector<16x8xf32>, vector<1x16xf32> -> vector<1x16xf32>
    %c0_9 = arith.constant 0 : index
    %c0_10 = arith.constant 0 : index
    %10 = memref.load %arg5[%c0_9, %c0_10] : memref<1x1xf32, #tpu.memory_space<smem>>
    %11 = vector.broadcast %10 : f32 to vector<1x16xf32>
    %12 = arith.addf %9, %11 : vector<1x16xf32>
    %13 = vector.extract_strided_slice %12 {offsets = [0, 0], sizes = [1, 2], strides = [1, 1]} : vector<1x16xf32> to vector<1x2xf32>
    %c0_11 = arith.constant 0 : index
    %c0_12 = arith.constant 0 : index
    %c0_13 = arith.constant 0 : index
    %14 = vector.load %arg6[%c0_11, %c0_12, %c0_13] : memref<1x8x2xf32, #tpu.memory_space<vmem>>, vector<1x1x2xf32>
    %15 = vector.shape_cast %14 : vector<1x1x2xf32> to vector<1x2xf32>
    %16 = vector.shape_cast %13 : vector<1x2xf32> to vector<1x1x2xf32>
    tpu.vector_store %arg6[%c0_11, %c0_12, %c0_13], %16 {strides = array<i32>} : memref<1x8x2xf32, #tpu.memory_space<vmem>>, vector<1x1x2xf32>,
    %17 = vector.extract_strided_slice %12 {offsets = [0, 2], sizes = [1, 2], strides = [1, 1]} : vector<1x16xf32> to vector<1x2xf32>
    %c0_14 = arith.constant 0 : index
    %c1 = arith.constant 1 : index
    %c0_15 = arith.constant 0 : index
    %18 = vector.load %arg6[%c0_14, %c1, %c0_15] : memref<1x8x2xf32, #tpu.memory_space<vmem>>, vector<1x1x2xf32>
    %19 = vector.shape_cast %18 : vector<1x1x2xf32> to vector<1x2xf32>
    %20 = vector.shape_cast %17 : vector<1x2xf32> to vector<1x1x2xf32>
    tpu.vector_store %arg6[%c0_14, %c1, %c0_15], %20 {strides = array<i32>} : memref<1x8x2xf32, #tpu.memory_space<vmem>>, vector<1x1x2xf32>,
    %21 = vector.extract_strided_slice %12 {offsets = [0, 4], sizes = [1, 2], strides = [1, 1]} : vector<1x16xf32> to vector<1x2xf32>
    %c0_16 = arith.constant 0 : index
    %c2 = arith.constant 2 : index
    %c0_17 = arith.constant 0 : index
    %22 = vector.load %arg6[%c0_16, %c2, %c0_17] : memref<1x8x2xf32, #tpu.memory_space<vmem>>, vector<1x1x2xf32>
    %23 = vector.shape_cast %22 : vector<1x1x2xf32> to vector<1x2xf32>
    %24 = vector.shape_cast %21 : vector<1x2xf32> to vector<1x1x2xf32>
    tpu.vector_store %arg6[%c0_16, %c2, %c0_17], %24 {strides = array<i32>} : memref<1x8x2xf32, #tpu.memory_space<vmem>>, vector<1x1x2xf32>,
    %25 = vector.extract_strided_slice %12 {offsets = [0, 6], sizes = [1, 2], strides = [1, 1]} : vector<1x16xf32> to vector<1x2xf32>
    %c0_18 = arith.constant 0 : index
    %c3 = arith.constant 3 : index
    %c0_19 = arith.constant 0 : index
    %26 = vector.load %arg6[%c0_18, %c3, %c0_19] : memref<1x8x2xf32, #tpu.memory_space<vmem>>, vector<1x1x2xf32>
    %27 = vector.shape_cast %26 : vector<1x1x2xf32> to vector<1x2xf32>
    %28 = vector.shape_cast %25 : vector<1x2xf32> to vector<1x1x2xf32>
    tpu.vector_store %arg6[%c0_18, %c3, %c0_19], %28 {strides = array<i32>} : memref<1x8x2xf32, #tpu.memory_space<vmem>>, vector<1x1x2xf32>,
    %29 = vector.extract_strided_slice %12 {offsets = [0, 8], sizes = [1, 2], strides = [1, 1]} : vector<1x16xf32> to vector<1x2xf32>
    %c0_20 = arith.constant 0 : index
    %c4 = arith.constant 4 : index
    %c0_21 = arith.constant 0 : index
    %30 = vector.load %arg6[%c0_20, %c4, %c0_21] : memref<1x8x2xf32, #tpu.memory_space<vmem>>, vector<1x1x2xf32>
    %31 = vector.shape_cast %30 : vector<1x1x2xf32> to vector<1x2xf32>
    %32 = vector.shape_cast %29 : vector<1x2xf32> to vector<1x1x2xf32>
    tpu.vector_store %arg6[%c0_20, %c4, %c0_21], %32 {strides = array<i32>} : memref<1x8x2xf32, #tpu.memory_space<vmem>>, vector<1x1x2xf32>,
    %33 = vector.extract_strided_slice %12 {offsets = [0, 10], sizes = [1, 2], strides = [1, 1]} : vector<1x16xf32> to vector<1x2xf32>
    %c0_22 = arith.constant 0 : index
    %c5 = arith.constant 5 : index
    %c0_23 = arith.constant 0 : index
    %34 = vector.load %arg6[%c0_22, %c5, %c0_23] : memref<1x8x2xf32, #tpu.memory_space<vmem>>, vector<1x1x2xf32>
    %35 = vector.shape_cast %34 : vector<1x1x2xf32> to vector<1x2xf32>
    %36 = vector.shape_cast %33 : vector<1x2xf32> to vector<1x1x2xf32>
    tpu.vector_store %arg6[%c0_22, %c5, %c0_23], %36 {strides = array<i32>} : memref<1x8x2xf32, #tpu.memory_space<vmem>>, vector<1x1x2xf32>,
    %37 = vector.extract_strided_slice %12 {offsets = [0, 12], sizes = [1, 2], strides = [1, 1]} : vector<1x16xf32> to vector<1x2xf32>
    %c0_24 = arith.constant 0 : index
    %c6 = arith.constant 6 : index
    %c0_25 = arith.constant 0 : index
    %38 = vector.load %arg6[%c0_24, %c6, %c0_25] : memref<1x8x2xf32, #tpu.memory_space<vmem>>, vector<1x1x2xf32>
    %39 = vector.shape_cast %38 : vector<1x1x2xf32> to vector<1x2xf32>
    %40 = vector.shape_cast %37 : vector<1x2xf32> to vector<1x1x2xf32>
    tpu.vector_store %arg6[%c0_24, %c6, %c0_25], %40 {strides = array<i32>} : memref<1x8x2xf32, #tpu.memory_space<vmem>>, vector<1x1x2xf32>,
    %41 = vector.extract_strided_slice %12 {offsets = [0, 14], sizes = [1, 2], strides = [1, 1]} : vector<1x16xf32> to vector<1x2xf32>
    %c0_26 = arith.constant 0 : index
    %c7 = arith.constant 7 : index
    %c0_27 = arith.constant 0 : index
    %42 = vector.load %arg6[%c0_26, %c7, %c0_27] : memref<1x8x2xf32, #tpu.memory_space<vmem>>, vector<1x1x2xf32>
    %43 = vector.shape_cast %42 : vector<1x1x2xf32> to vector<1x2xf32>
    %44 = vector.shape_cast %41 : vector<1x2xf32> to vector<1x1x2xf32>
    tpu.vector_store %arg6[%c0_26, %c7, %c0_27], %44 {strides = array<i32>} : memref<1x8x2xf32, #tpu.memory_space<vmem>>, vector<1x1x2xf32>,
    return
  }
  func.func @transform_0(%arg0: i32) -> (i32, i32) {
    %c0_i32 = arith.constant 0 : i32
    %c0_i32_0 = arith.constant 0 : i32
    return %arg0, %c0_i32 : i32, i32
  }
  func.func @transform_1(%arg0: i32) -> (i32, i32) {
    %c0_i32 = arith.constant 0 : i32
    %c0_i32_0 = arith.constant 0 : i32
    %c0_i32_1 = arith.constant 0 : i32
    return %c0_i32, %c0_i32_0 : i32, i32
  }
  func.func @transform_2(%arg0: i32) -> (i32, i32) {
    %c0_i32 = arith.constant 0 : i32
    %c0_i32_0 = arith.constant 0 : i32
    %c0_i32_1 = arith.constant 0 : i32
    return %c0_i32, %c0_i32_0 : i32, i32
  }
  func.func @transform_3(%arg0: i32) -> (i32, i32) {
    %c0_i32 = arith.constant 0 : i32
    %c0_i32_0 = arith.constant 0 : i32
    %c0_i32_1 = arith.constant 0 : i32
    return %c0_i32, %c0_i32_0 : i32, i32
  }
  func.func @transform_4(%arg0: i32) -> (i32, i32) {
    %c0_i32 = arith.constant 0 : i32
    %c0_i32_0 = arith.constant 0 : i32
    %c0_i32_1 = arith.constant 0 : i32
    return %c0_i32, %c0_i32_0 : i32, i32
  }
  func.func @transform_5(%arg0: i32) -> (i32, i32, i32) {
    %c0_i32 = arith.constant 0 : i32
    %c0_i32_0 = arith.constant 0 : i32
    %c0_i32_1 = arith.constant 0 : i32
    return %arg0, %c0_i32, %c0_i32_0 : i32, i32, i32
  }
}

</mosaic_0001>

<bundles_post_ra>
// kernel: tpu_custom_call.1
= control target key start
LH: loop header
LB: loop body
LE: loop exit
PB: predicated region body
PF: predicated region fallthrough
CT: control target
= control target key end

     0   :  { %vm34_vm0 = vcmask 261120   ;;  %v291_v8 = vmov 0.0|0.0   ;;  %vm292_vm1 = vmmov 0   ;;  %v293_v9 = vmov 0.0   ;;  %s295_s9 = smov 126   ;;  %s296_s12 = smov 120   ;;  %s390_s1 = inlined_call_operand.vmem [shape: f32[32,8], index: 1, kind: input, shape index: {}]   ;;  %s391_s0 = inlined_call_operand.vmem [shape: f32[16,32], index: 0, kind: input, shape index: {}]   ;;  %s392_s2 = inlined_call_operand.vmem [shape: f32[1,8], index: 2, kind: input, shape index: {}]   ;;  %s393_s3 = inlined_call_operand.vmem [shape: f32[1,8], index: 3, kind: input, shape index: {}]   ;;  %s394_s4 = inlined_call_operand.<no memory space> [shape: f32[1,1], index: 4, kind: input, shape index: {}]   ;;  %s395_s5 = inlined_call_operand.vmem [shape: f32[1,8,2], index: 5, kind: output, shape index: {}]  }
   0x1   :  { %v23_v0 = vld [vmem:[%s390_s1] sm:$0xff]  ;;  %v24_v1 = vld [vmem:[%s390_s1 + $0x8] sm:$0xff]  ;;  %v25_v2 = vld [vmem:[%s390_s1 + $0x10] sm:$0xff]  ;;  %277 = vmatprep.subr.bf16.mxu1 %v291_v8  ;;  %266 = vmatprep.mubr.msk.f32.mxu1 %vm292_vm1, %v293_v9  ;;  %vm121_vm2 = vcmask 64512   ;;  %v120_v19 = vstv %s394_s4  ;;  %vm201_vm4 = vcmask 8192   ;;  %s298_s13 = smov 116  }
   0x2   :  { %v269_v3 = vpack.c.bf16 %v24_v1, %v23_v0  ;;  %v26_v4 = vld [vmem:[%s390_s1 + $0x18] sm:$0xff]  ;;  %v21_v5 = vld [vmem:[%s391_s0] sm:$0xff]  ;;  %v22_v7 = vld [vmem:[%s391_s0 + $0x8] sm:$0xff]  ;;  %s299_s4 = smov 118   ;;  %s300_s14 = smov 114  }
   0x3   :  { %v273_v6 = vpack.c.bf16 %v26_v4, %v25_v2  ;;  %259 = vmatprep.mubr.msk.f32.mxu0 %vm34_vm0, %v21_v5  ;;  %v236_v10 = vld [vmem:[%s392_s2] ss:$0 sm:$0xff]  ;;  %vm279_vm3 = vmpackc.low %vm121_vm2, %vm121_vm2  ;;  %s294_s2 = smov 122  }
   0x4   :  { %270 = vmatprep.subr.bf16.mxu0 %v269_v3  ;;  %v118_v18 = vld [vmem:[%s393_s3] sm:$0x1]  ;;  %s297_s3 = smov 124  }
   0x5   :  { %272 = vmatpush3.bf16.msra.mxu0 %v269_v3 }
   0x6   :  { %274 = vmatprep.subr.bf16.mxu0 %v273_v6 }
   0x9   :  { %276 = vmatpush3.bf16.msra.mxu0 %v273_v6 }
   0xc   :  { %260 = vmatmul.mubr.msk.f32.vlgmr.msra.gmra.mrb[0].mxu0 %vm34_vm0, %v22_v7 }
  0xdf   :  { %v261_v11 = vpop.f32.mrb[0].mxu0 }
  0xe0   :  { %v113_v12 = vadd.f32 %v261_v11, %v236_v10  ;;  %v107_v13 = vpop.f32.mrb[1].mxu0 }
  0xe1   :  { %v108_v14 = vadd.f32 %v236_v10, %v107_v13 }
  0xe2   :  { %v117_v15 = vmax.f32 %v113_v12, 0.0 }
  0xe3   :  { %v116_v16 = vmax.f32 %v108_v14, 0.0 }
  0xe5   :  { %v278_v17 = vpack.c.bf16 %v117_v15, %v116_v16 }
  0xe7   :  { %280 = vmatpush3.bf16.xpose.msk.msra.mxu1 %vm279_vm3, %v278_v17 }
  0xee   :  { %267 = vmatmul.mubr.msk.f32.vlgmr.msra.gmra.mrb[0].mxu1 %vm121_vm2, %v118_v18 }
 0x1c1   :  { %v197_v20 = vpop.f32.mrb[0].mxu1 }
 0x1c2   :  { %v198_v21 = vadd.f32 %v197_v20, %v120_v19  ;;  %v268_v22 = vpop.f32.mrb[1].mxu1 }
 0x1c4   :  { %212 = vrot.lane.b32.xlu1 %v198_v21, %s294_s2  ;;  %204 = vrot.lane.b32.xlu0 %v198_v21, %s295_s9  ;;  %202 = vst.msk [vmem:[%s395_s5] sm:$0x1] %vm201_vm4, %v198_v21 }
 0x1c8   :  { %216 = vrot.lane.b32.xlu1 %v198_v21, %s296_s12  ;;  %208 = vrot.lane.b32.xlu0 %v198_v21, %s297_s3 }
 0x1cc   :  { %224 = vrot.lane.b32.xlu1 %v198_v21, %s298_s13  ;;  %220 = vrot.lane.b32.xlu0 %v198_v21, %s299_s4 }
 0x1d0   :  { %228 = vrot.lane.b32.xlu0 %v198_v21, %s300_s14 }
 0x236   :  { %v213_v23 = vpop.permute.xlu1 %212  ;;  %v205_v24 = vpop.permute.xlu0 %204 }
 0x237   :  { %215 = vst.msk [vmem:[%s395_s5 + $0x3] sm:$0x1] %vm201_vm4, %v213_v23  ;;  %207 = vst.msk [vmem:[%s395_s5 + $0x1] sm:$0x1] %vm201_vm4, %v205_v24 }
 0x23a   :  { %v217_v25 = vpop.permute.xlu1 %216  ;;  %v209_v26 = vpop.permute.xlu0 %208 }
 0x23b   :  { %219 = vst.msk [vmem:[%s395_s5 + $0x4] sm:$0x1] %vm201_vm4, %v217_v25  ;;  %211 = vst.msk [vmem:[%s395_s5 + $0x2] sm:$0x1] %vm201_vm4, %v209_v26 }
 0x23e   :  { %v225_v27 = vpop.permute.xlu1 %224  ;;  %v221_v28 = vpop.permute.xlu0 %220 }
 0x23f   :  { %227 = vst.msk [vmem:[%s395_s5 + $0x6] sm:$0x1] %vm201_vm4, %v225_v27  ;;  %223 = vst.msk [vmem:[%s395_s5 + $0x5] sm:$0x1] %vm201_vm4, %v221_v28 }
 0x242   :  { %v229_v29 = vpop.permute.xlu0 %228 }
 0x243   :  { %231 = vst.msk [vmem:[%s395_s5 + $0x7] sm:$0x1] %vm201_vm4, %v229_v29 }

</bundles_post_ra>
